<compile_context>
chip_gen: v5e
topology: v5e:2x2
jax: 0.10.0
libtpu: 0.0.40
codegen_flags: <defaults>
</compile_context>

<pallas_src>
import jax
import jax.numpy as jnp
from jax.experimental import pallas as pl
from jax.experimental.pallas import tpu as pltpu


HIDDEN = 50  # hardcoded hidden_size=50 in the PyTorch module


def _mfae_kernel(x_ref, eps_ref,
                 we_ref, be_ref,
                 whd_ref, bhd_ref,
                 wd_ref, bd_ref,
                 wo_ref, bo_ref,
                 recon_ref, mulv_ref):
    x = x_ref[...]
    eps = eps_ref[...].astype(jnp.float32)

    # --- Encoder hidden layer ---
    h = jnp.dot(x, we_ref[...], preferred_element_type=jnp.float32) + be_ref[...]
    h = jnp.maximum(h, 0.0)

    # --- Fused mu|logvar head: one matmul over [H, 2L] ---
    mulv = jnp.dot(h.astype(whd_ref.dtype), whd_ref[...],
                   preferred_element_type=jnp.float32) + bhd_ref[...]
    L = mulv.shape[-1] // 2
    mu = mulv[:, :L]
    lv = mulv[:, L:]

    # --- Reparameterized sample: Normal(mu, logvar).rsample() = mu + logvar*eps ---
    z = mu + lv * eps

    # --- Decoder ---
    h2 = jnp.dot(z.astype(wd_ref.dtype), wd_ref[...],
                 preferred_element_type=jnp.float32) + bd_ref[...]
    h2 = jnp.maximum(h2, 0.0)

    logits = jnp.dot(h2.astype(wo_ref.dtype), wo_ref[...],
                     preferred_element_type=jnp.float32) + bo_ref[...]

    recon_ref[...] = jax.nn.sigmoid(logits).astype(recon_ref.dtype)
    mulv_ref[...] = mulv.astype(mulv_ref.dtype)


def mean_field_autoencoder_forward(x, eps, params, *,
                                   block_b=512,
                                   compute_dtype=jnp.bfloat16):
    """x: [B, feature_dim] f32, eps: [B, latent_dim] f32 standard-normal noise.

    Returns (x_recon [B,F] f32, latent_mu [B,L] f32, latent_logvar [B,L] f32).
    """
    B, F = x.shape
    H = params["we"].shape[1]
    L = params["wmu"].shape[1]

    cd = jnp.dtype(compute_dtype)

    # Fuse the two heads (columns independent -> mathematically identical).
    whd = jnp.concatenate([params["wmu"], params["wlv"]], axis=1).astype(cd)
    bhd = jnp.concatenate([params["bmu"], params["blv"]], axis=1)  # f32 [1, 2L]

    xin = x.astype(cd)
    epsin = eps.astype(cd)
    we = params["we"].astype(cd)
    wd = params["wd"].astype(cd)
    wo = params["wo"].astype(cd)
    be, bd, bo = params["be"], params["bd"], params["bo"]  # f32 biases

    # Batch tile: multiple of 8 (or full B), sized well under v7x's 64 MiB VMEM.
    TB = B if B <= block_b else block_b
    grid = (pl.cdiv(B, TB),)

    def resident(shp):
        return pl.BlockSpec(shp, lambda i: (0,) * len(shp))

    def batched(d):
        return pl.BlockSpec((TB, d), lambda i: (i, 0))

    in_arrays = [xin, epsin, we, be, whd, bhd, wd, bd, wo, bo]
    in_specs = [
        batched(F), batched(L),
        resident(we.shape), resident(be.shape),
        resident(whd.shape), resident(bhd.shape),
        resident(wd.shape), resident(bd.shape),
        resident(wo.shape), resident(bo.shape),
    ]

    out_shape = (
        jax.ShapeDtypeStruct((B, F), jnp.float32),       # x_recon
        jax.ShapeDtypeStruct((B, 2 * L), jnp.float32),   # packed [mu | logvar]
    )
    out_specs = (batched(F), batched(2 * L))

    isz = cd.itemsize
    weight_bytes = (F * H + H * 2 * L + L * H + H * F) * isz
    bias_bytes = (H + 2 * L + H + F) * 4
    cost = pl.CostEstimate(
        flops=2 * B * (F * H + H * 2 * L + L * H + H * F),
        transcendentals=B * F,  # sigmoid
        bytes_accessed=(B * F * isz + B * L * isz          # x, eps in
                        + B * F * 4 + B * 2 * L * 4        # recon, mulv out
                        + weight_bytes + bias_bytes),
    )

    recon, mulv = pl.pallas_call(
        _mfae_kernel,
        out_shape=out_shape,
        grid_spec=pltpu.PrefetchScalarGridSpec(
            num_scalar_prefetch=0,
            grid=grid,
            in_specs=in_specs,
            out_specs=out_specs,
        ),
        compiler_params=pltpu.CompilerParams(
            dimension_semantics=("parallel",),        # megacore-shardable (v7x)
            vmem_limit_bytes=48 * 1024 * 1024,        # fits v7x's 64 MiB VMEM
        ),
        cost_estimate=cost,
    )(*in_arrays)

    mu = mulv[:, :L]
    lv = mulv[:, L:]
    return recon, mu, lv


def init_params(key, feature_dim, latent_dim, hidden=HIDDEN):
    """Deterministic init mimicking PyTorch nn.Linear default U(-1/sqrt(in), 1/sqrt(in)).

    Weights stored as [in, out] (transposed vs. PyTorch), biases as [1, out].
    """
    def linear(k, in_dim, out_dim):
        kw, kb = jax.random.split(k)
        bound = 1.0 / jnp.sqrt(in_dim)
        w = jax.random.uniform(kw, (in_dim, out_dim), jnp.float32, -bound, bound)
        b = jax.random.uniform(kb, (1, out_dim), jnp.float32, -bound, bound)
        return w, b

    k = jax.random.split(key, 5)
    we, be = linear(k[0], feature_dim, hidden)     # encoder.fc_input
    wmu, bmu = linear(k[1], hidden, latent_dim)    # encoder.fc_mu
    wlv, blv = linear(k[2], hidden, latent_dim)    # encoder.fc_logvar
    wd, bd = linear(k[3], latent_dim, hidden)      # decoder.fc_input
    wo, bo = linear(k[4], hidden, feature_dim)     # decoder.fc_out
    return dict(we=we, be=be, wmu=wmu, bmu=bmu, wlv=wlv, blv=blv,
                wd=wd, bd=bd, wo=wo, bo=bo)


def reference_forward(x, eps, p, compute_dtype=jnp.bfloat16):
    """Pure-JAX reference mirroring the kernel's exact dtype path."""
    cd = jnp.dtype(compute_dtype)
    L = p["wmu"].shape[1]
    whd = jnp.concatenate([p["wmu"], p["wlv"]], axis=1).astype(cd)
    bhd = jnp.concatenate([p["bmu"], p["blv"]], axis=1)

    x16 = x.astype(cd)
    e = eps.astype(cd).astype(jnp.float32)

    h = jnp.dot(x16, p["we"].astype(cd), preferred_element_type=jnp.float32) + p["be"]
    h = jnp.maximum(h, 0.0)
    mulv = jnp.dot(h.astype(cd), whd, preferred_element_type=jnp.float32) + bhd
    mu, lv = mulv[:, :L], mulv[:, L:]
    z = mu + lv * e
    h2 = jnp.dot(z.astype(cd), p["wd"].astype(cd),
                 preferred_element_type=jnp.float32) + p["bd"]
    h2 = jnp.maximum(h2, 0.0)
    recon = jax.nn.sigmoid(
        jnp.dot(h2.astype(cd), p["wo"].astype(cd),
                preferred_element_type=jnp.float32) + p["bo"])
    return recon, mu, lv


if __name__ == "__main__":
    feature_dim, latent_dim, batch = 16, 4, 8

    key = jax.random.PRNGKey(0)
    k_params, k_x, k_eps = jax.random.split(key, 3)

    params = init_params(k_params, feature_dim, latent_dim)
    x = jax.random.normal(k_x, (batch, feature_dim), jnp.float32)
    eps = jax.random.normal(k_eps, (batch, latent_dim), jnp.float32)

    recon, mu, logvar = mean_field_autoencoder_forward(x, eps, params)
    jax.block_until_ready((recon, mu, logvar))

    # sanity-check against a dtype-matched pure-JAX reference
    r_ref, mu_ref, lv_ref = reference_forward(x, eps, params)
    assert jnp.allclose(recon, r_ref, atol=2e-3, rtol=2e-3)
    assert jnp.allclose(mu, mu_ref, atol=2e-3, rtol=2e-3)
    assert jnp.allclose(logvar, lv_ref, atol=2e-3, rtol=2e-3)

    print("KERNEL_OK")
</pallas_src>

<mosaic_0001>
module attributes {stable_mosaic.version = 11 : i64} {
  func.func @_mfae_kernel(%arg0: i32, %arg1: memref<8x16xbf16, #tpu.memory_space<vmem>>, %arg2: memref<8x4xbf16, #tpu.memory_space<vmem>>, %arg3: memref<16x50xbf16, #tpu.memory_space<vmem>>, %arg4: memref<1x50xf32, #tpu.memory_space<vmem>>, %arg5: memref<50x8xbf16, #tpu.memory_space<vmem>>, %arg6: memref<1x8xf32, #tpu.memory_space<vmem>>, %arg7: memref<4x50xbf16, #tpu.memory_space<vmem>>, %arg8: memref<1x50xf32, #tpu.memory_space<vmem>>, %arg9: memref<50x16xbf16, #tpu.memory_space<vmem>>, %arg10: memref<1x16xf32, #tpu.memory_space<vmem>>, %arg11: memref<8x16xf32, #tpu.memory_space<vmem>>, %arg12: memref<8x8xf32, #tpu.memory_space<vmem>>) attributes {dimension_semantics = [#tpu.dimension_semantics<parallel>], iteration_bounds = array<i64: 1>, scalar_prefetch = 0 : i64, scratch_operands = 0 : i64, tpu.core_type = #tpu.core_type<tc>, window_params = [{transform_indices = @transform_0, window_bounds = array<i64: 8, 16>}, {transform_indices = @transform_1, window_bounds = array<i64: 8, 4>}, {pipeline_mode = #tpu.pipeline_mode<synchronous>, transform_indices = @transform_2, window_bounds = array<i64: 16, 50>}, {pipeline_mode = #tpu.pipeline_mode<synchronous>, transform_indices = @transform_3, window_bounds = array<i64: 1, 50>}, {pipeline_mode = #tpu.pipeline_mode<synchronous>, transform_indices = @transform_4, window_bounds = array<i64: 50, 8>}, {pipeline_mode = #tpu.pipeline_mode<synchronous>, transform_indices = @transform_5, window_bounds = array<i64: 1, 8>}, {pipeline_mode = #tpu.pipeline_mode<synchronous>, transform_indices = @transform_6, window_bounds = array<i64: 4, 50>}, {pipeline_mode = #tpu.pipeline_mode<synchronous>, transform_indices = @transform_7, window_bounds = array<i64: 1, 50>}, {pipeline_mode = #tpu.pipeline_mode<synchronous>, transform_indices = @transform_8, window_bounds = array<i64: 50, 16>}, {pipeline_mode = #tpu.pipeline_mode<synchronous>, transform_indices = @transform_9, window_bounds = array<i64: 1, 16>}, {transform_indices = @transform_10, window_bounds = array<i64: 8, 16>}, {transform_indices = @transform_11, window_bounds = array<i64: 8, 8>}]} {
    %c0 = arith.constant 0 : index
    %c0_0 = arith.constant 0 : index
    %0 = vector.load %arg1[%c0, %c0_0] : memref<8x16xbf16, #tpu.memory_space<vmem>>, vector<8x16xbf16>
    %c0_1 = arith.constant 0 : index
    %c0_2 = arith.constant 0 : index
    %1 = vector.load %arg2[%c0_1, %c0_2] : memref<8x4xbf16, #tpu.memory_space<vmem>>, vector<8x4xbf16>
    %2 = arith.extf %1 : vector<8x4xbf16> to vector<8x4xf32>
    %c0_3 = arith.constant 0 : index
    %c0_4 = arith.constant 0 : index
    %3 = vector.load %arg3[%c0_3, %c0_4] : memref<16x50xbf16, #tpu.memory_space<vmem>>, vector<16x50xbf16>
    %cst = arith.constant dense<0.000000e+00> : vector<8x50xf32>
    %4 = tpu.matmul %0, %3, %cst {dimension_numbers = #tpu.dot_dimension_numbers<[1], [0], [0], [1], [0, 0, 1, 1], [], []>} : vector<8x16xbf16>, vector<16x50xbf16>, vector<8x50xf32> -> vector<8x50xf32>
    %c0_5 = arith.constant 0 : index
    %c0_6 = arith.constant 0 : index
    %5 = vector.load %arg4[%c0_5, %c0_6] : memref<1x50xf32, #tpu.memory_space<vmem>>, vector<1x50xf32>
    %6 = vector.broadcast %5 : vector<1x50xf32> to vector<8x50xf32>
    %7 = arith.addf %4, %6 : vector<8x50xf32>
    %cst_7 = arith.constant 0.000000e+00 : f32
    %8 = vector.broadcast %cst_7 : f32 to vector<8x50xf32>
    %9 = arith.maximumf %7, %8 : vector<8x50xf32>
    %10 = arith.truncf %9 : vector<8x50xf32> to vector<8x50xbf16>
    %c0_8 = arith.constant 0 : index
    %c0_9 = arith.constant 0 : index
    %11 = vector.load %arg5[%c0_8, %c0_9] : memref<50x8xbf16, #tpu.memory_space<vmem>>, vector<50x8xbf16>
    %cst_10 = arith.constant dense<0.000000e+00> : vector<8x8xf32>
    %12 = tpu.matmul %10, %11, %cst_10 {dimension_numbers = #tpu.dot_dimension_numbers<[1], [0], [0], [1], [0, 0, 1, 1], [], []>} : vector<8x50xbf16>, vector<50x8xbf16>, vector<8x8xf32> -> vector<8x8xf32>
    %c0_11 = arith.constant 0 : index
    %c0_12 = arith.constant 0 : index
    %13 = vector.load %arg6[%c0_11, %c0_12] : memref<1x8xf32, #tpu.memory_space<vmem>>, vector<1x8xf32>
    %14 = vector.broadcast %13 : vector<1x8xf32> to vector<8x8xf32>
    %15 = arith.addf %12, %14 : vector<8x8xf32>
    %16 = vector.extract_strided_slice %15 {offsets = [0, 0], sizes = [8, 4], strides = [1, 1]} : vector<8x8xf32> to vector<8x4xf32>
    %17 = vector.extract_strided_slice %15 {offsets = [0, 4], sizes = [8, 4], strides = [1, 1]} : vector<8x8xf32> to vector<8x4xf32>
    %18 = arith.mulf %17, %2 : vector<8x4xf32>
    %19 = arith.addf %16, %18 : vector<8x4xf32>
    %20 = arith.truncf %19 : vector<8x4xf32> to vector<8x4xbf16>
    %c0_13 = arith.constant 0 : index
    %c0_14 = arith.constant 0 : index
    %21 = vector.load %arg7[%c0_13, %c0_14] : memref<4x50xbf16, #tpu.memory_space<vmem>>, vector<4x50xbf16>
    %cst_15 = arith.constant dense<0.000000e+00> : vector<8x50xf32>
    %22 = tpu.matmul %20, %21, %cst_15 {dimension_numbers = #tpu.dot_dimension_numbers<[1], [0], [0], [1], [0, 0, 1, 1], [], []>} : vector<8x4xbf16>, vector<4x50xbf16>, vector<8x50xf32> -> vector<8x50xf32>
    %c0_16 = arith.constant 0 : index
    %c0_17 = arith.constant 0 : index
    %23 = vector.load %arg8[%c0_16, %c0_17] : memref<1x50xf32, #tpu.memory_space<vmem>>, vector<1x50xf32>
    %24 = vector.broadcast %23 : vector<1x50xf32> to vector<8x50xf32>
    %25 = arith.addf %22, %24 : vector<8x50xf32>
    %cst_18 = arith.constant 0.000000e+00 : f32
    %26 = vector.broadcast %cst_18 : f32 to vector<8x50xf32>
    %27 = arith.maximumf %25, %26 : vector<8x50xf32>
    %28 = arith.truncf %27 : vector<8x50xf32> to vector<8x50xbf16>
    %c0_19 = arith.constant 0 : index
    %c0_20 = arith.constant 0 : index
    %29 = vector.load %arg9[%c0_19, %c0_20] : memref<50x16xbf16, #tpu.memory_space<vmem>>, vector<50x16xbf16>
    %cst_21 = arith.constant dense<0.000000e+00> : vector<8x16xf32>
    %30 = tpu.matmul %28, %29, %cst_21 {dimension_numbers = #tpu.dot_dimension_numbers<[1], [0], [0], [1], [0, 0, 1, 1], [], []>} : vector<8x50xbf16>, vector<50x16xbf16>, vector<8x16xf32> -> vector<8x16xf32>
    %c0_22 = arith.constant 0 : index
    %c0_23 = arith.constant 0 : index
    %31 = vector.load %arg10[%c0_22, %c0_23] : memref<1x16xf32, #tpu.memory_space<vmem>>, vector<1x16xf32>
    %32 = vector.broadcast %31 : vector<1x16xf32> to vector<8x16xf32>
    %33 = arith.addf %30, %32 : vector<8x16xf32>
    %34 = arith.negf %33 : vector<8x16xf32>
    %35 = math.exp %34 : vector<8x16xf32>
    %cst_24 = arith.constant 1.000000e+00 : f32
    %36 = vector.broadcast %cst_24 : f32 to vector<8x16xf32>
    %37 = arith.addf %36, %35 : vector<8x16xf32>
    %38 = arith.divf %36, %37 : vector<8x16xf32>
    %c0_25 = arith.constant 0 : index
    %c0_26 = arith.constant 0 : index
    %39 = vector.load %arg11[%c0_25, %c0_26] : memref<8x16xf32, #tpu.memory_space<vmem>>, vector<8x16xf32>
    tpu.vector_store %arg11[%c0_25, %c0_26], %38 {strides = array<i32>} : memref<8x16xf32, #tpu.memory_space<vmem>>, vector<8x16xf32>,
    %c0_27 = arith.constant 0 : index
    %c0_28 = arith.constant 0 : index
    %40 = vector.load %arg12[%c0_27, %c0_28] : memref<8x8xf32, #tpu.memory_space<vmem>>, vector<8x8xf32>
    tpu.vector_store %arg12[%c0_27, %c0_28], %15 {strides = array<i32>} : memref<8x8xf32, #tpu.memory_space<vmem>>, vector<8x8xf32>,
    return
  }
  func.func @transform_0(%arg0: i32) -> (i32, i32) {
    %c0_i32 = arith.constant 0 : i32
    %c0_i32_0 = arith.constant 0 : i32
    return %arg0, %c0_i32 : i32, i32
  }
  func.func @transform_1(%arg0: i32) -> (i32, i32) {
    %c0_i32 = arith.constant 0 : i32
    %c0_i32_0 = arith.constant 0 : i32
    return %arg0, %c0_i32 : i32, i32
  }
  func.func @transform_2(%arg0: i32) -> (i32, i32) {
    %c0_i32 = arith.constant 0 : i32
    %c0_i32_0 = arith.constant 0 : i32
    %c0_i32_1 = arith.constant 0 : i32
    return %c0_i32, %c0_i32_0 : i32, i32
  }
  func.func @transform_3(%arg0: i32) -> (i32, i32) {
    %c0_i32 = arith.constant 0 : i32
    %c0_i32_0 = arith.constant 0 : i32
    %c0_i32_1 = arith.constant 0 : i32
    return %c0_i32, %c0_i32_0 : i32, i32
  }
  func.func @transform_4(%arg0: i32) -> (i32, i32) {
    %c0_i32 = arith.constant 0 : i32
    %c0_i32_0 = arith.constant 0 : i32
    %c0_i32_1 = arith.constant 0 : i32
    return %c0_i32, %c0_i32_0 : i32, i32
  }
  func.func @transform_5(%arg0: i32) -> (i32, i32) {
    %c0_i32 = arith.constant 0 : i32
    %c0_i32_0 = arith.constant 0 : i32
    %c0_i32_1 = arith.constant 0 : i32
    return %c0_i32, %c0_i32_0 : i32, i32
  }
  func.func @transform_6(%arg0: i32) -> (i32, i32) {
    %c0_i32 = arith.constant 0 : i32
    %c0_i32_0 = arith.constant 0 : i32
    %c0_i32_1 = arith.constant 0 : i32
    return %c0_i32, %c0_i32_0 : i32, i32
  }
  func.func @transform_7(%arg0: i32) -> (i32, i32) {
    %c0_i32 = arith.constant 0 : i32
    %c0_i32_0 = arith.constant 0 : i32
    %c0_i32_1 = arith.constant 0 : i32
    return %c0_i32, %c0_i32_0 : i32, i32
  }
  func.func @transform_8(%arg0: i32) -> (i32, i32) {
    %c0_i32 = arith.constant 0 : i32
    %c0_i32_0 = arith.constant 0 : i32
    %c0_i32_1 = arith.constant 0 : i32
    return %c0_i32, %c0_i32_0 : i32, i32
  }
  func.func @transform_9(%arg0: i32) -> (i32, i32) {
    %c0_i32 = arith.constant 0 : i32
    %c0_i32_0 = arith.constant 0 : i32
    %c0_i32_1 = arith.constant 0 : i32
    return %c0_i32, %c0_i32_0 : i32, i32
  }
  func.func @transform_10(%arg0: i32) -> (i32, i32) {
    %c0_i32 = arith.constant 0 : i32
    %c0_i32_0 = arith.constant 0 : i32
    return %arg0, %c0_i32 : i32, i32
  }
  func.func @transform_11(%arg0: i32) -> (i32, i32) {
    %c0_i32 = arith.constant 0 : i32
    %c0_i32_0 = arith.constant 0 : i32
    return %arg0, %c0_i32 : i32, i32
  }
}

</mosaic_0001>

<bundles_post_ra>
// kernel: tpu_custom_call.1
= control target key start
LH: loop header
LB: loop body
LE: loop exit
PB: predicated region body
PF: predicated region fallthrough
CT: control target
= control target key end

     0   :  { %17 = vsyncpa [#allocation3], 0  ;;  %vm55_vm0 = vcmask 130048   ;;  %vm110_vm1 = vcmask 1040384   ;;  %s499_s0 = inlined_call_operand.vmem [shape: bf16[8,16], index: 0, kind: input, shape index: {}]   ;;  %s500_s1 = inlined_call_operand.vmem [shape: bf16[8,4], index: 1, kind: input, shape index: {}]   ;;  %s501_s2 = inlined_call_operand.vmem [shape: bf16[16,50], index: 2, kind: input, shape index: {}]   ;;  %s502_s3 = inlined_call_operand.vmem [shape: f32[1,50], index: 3, kind: input, shape index: {}]   ;;  %s503_s4 = inlined_call_operand.vmem [shape: bf16[50,8], index: 4, kind: input, shape index: {}]   ;;  %s504_s5 = inlined_call_operand.vmem [shape: f32[1,8], index: 5, kind: input, shape index: {}]   ;;  %s505_s6 = inlined_call_operand.vmem [shape: bf16[4,50], index: 6, kind: input, shape index: {}]   ;;  %s506_s7 = inlined_call_operand.vmem [shape: f32[1,50], index: 7, kind: input, shape index: {}]   ;;  %s507_s8 = inlined_call_operand.vmem [shape: bf16[50,16], index: 8, kind: input, shape index: {}]   ;;  %s508_s9 = inlined_call_operand.vmem [shape: f32[1,16], index: 9, kind: input, shape index: {}]   ;;  %s509_s10 = inlined_call_operand.hbm [shape: f32[8,16], index: 10, kind: output, shape index: {0}]   ;;  %s510_s11 = inlined_call_operand.hbm [shape: f32[8,8], index: 11, kind: output, shape index: {1}]  }
   0x1   :  { %v304_v0 = vld [vmem:[%s501_s2] sm:$0xff]  ;;  %v80_v1 = vld [vmem:[%s503_s4 + $0x18] sm:$0x1] }
   0x2   :  { %v40_v2 = vld [vmem:[%s499_s0] sm:$0xf]  ;;  %v98_v3 = vunpack.c.l.b16 %v80_v1  ;;  %66 = vmatpush.bf16.msra.mxu0 %v304_v0 }
   0x4   :  { %v102_v4 = vpack.c.b16 %v98_v3, %v98_v3 }
   0x5   :  { %18 = vsyncpa [#allocation5], 0  ;;  %275 = vmatmul.msk.bf16.vlgmr.msra.gmra.mxu0 %vm55_vm0, %v40_v2  ;;  %v307_v6 = vld [vmem:[%s503_s4 + $0x10] sm:$0xff]  ;;  %v306_v7 = vld [vmem:[%s503_s4 + $0x8] sm:$0xff]  ;;  %s375_s29 = smov 4   ;;  %vm106_vm2 = vcmask 408576  }
   0x6   :  { %v112_v5 = vsel %vm110_vm1, %v102_v4, 0  ;;  %v305_v8 = vld [vmem:[%s503_s4] sm:$0xff]  ;;  %vm237_vm3 = vcmask 64512   ;;  %vm147_vm4 = vcmask 1041408   ;;  %v172_v25 = vld [vmem:[%s507_s8 + $0x18] sm:$0x1] }
   0x7   :  { %118 = vmatpush.bf16.msra.mxu1 %v112_v5  ;;  %v41_v9 = vld [vmem:[%s500_s1] sm:$0xf]  ;;  %s376_s1 = smov 124   ;;  %v190_v26 = vunpack.c.l.b16 %v172_v25  ;;  %v310_v29 = vld [vmem:[%s507_s8 + $0x10] sm:$0xff]  ;;  %vm143_vm5 = vcmask 31744   ;;  %v309_v33 = vld [vmem:[%s507_s8 + $0x8] sm:$0xff] }
   0x8   :  { %v42_v10 = vunpack.c.l.bf16 %v41_v9  ;;  %v315_v11 = vld [vmem:[%s502_s3] ss:$0 sm:$0xff]  ;;  %s377_s2 = smov [#allocation4]   ;;  %s257_s0 = sshll.u32 %s510_s11, 4  ;;  %s258_s0 = int_to_ptr.hbm [resolvable:$true] %s257_s0 }
   0x9   :  { %v316_v17 = vld [vmem:[%s504_s5] ss:$0 sm:$0xff]  ;;  %v194_v27 = vpack.c.b16 %v190_v26, %v190_v26  ;;  %s255_s23 = sshll.u32 %s377_s2, 4  ;;  %s256_s23 = int_to_ptr.vmem [resolvable:$true] %s255_s23 }
   0xa   :  { %128 = vrot.lane.b32.xlu0 %v42_v10, %s375_s29  ;;  %v138_v23 = vld [vmem:[%s505_s6] sm:$0x3] }
   0xb   :  { %119 = vmatpush.bf16.msra.mxu1 %v307_v6  ;;  %v149_v24 = vsel %vm147_vm4, %v138_v23, 0  ;;  %v202_v28 = vsel %vm110_vm1, %v194_v27, 0  ;;  %v308_v34 = vld [vmem:[%s507_s8] sm:$0xff] }
   0xc   :  { %158 = vmatpush.bf16.msra.mxu2 %v149_v24  ;;  %208 = vmatpush.bf16.msra.mxu3 %v202_v28  ;;  %v317_v35 = vld [vmem:[%s506_s7] ss:$0 sm:$0xff]  ;;  %s378_s7 = smov [#allocation2]  }
   0xd   :  { %v318_v41 = vld [vmem:[%s508_s9] ss:$0 sm:$0xff]  ;;  %s244_s11 = sshll.u32 %s378_s7, 4  ;;  %s246_s9 = sshll.u32 %s509_s10, 4  ;;  %s245_s11 = int_to_ptr.vmem [resolvable:$true] %s244_s11  ;;  %s247_s9 = int_to_ptr.hbm [resolvable:$true] %s246_s9 }
   0xf   :  { %120 = vmatpush.bf16.msra.mxu1 %v306_v7 }
  0x10   :  { %209 = vmatpush.bf16.msra.mxu3 %v310_v29 }
  0x13   :  { %121 = vmatpush.bf16.msra.mxu1 %v305_v8 }
  0x14   :  { %210 = vmatpush.bf16.msra.mxu3 %v309_v33 }
  0x18   :  { %211 = vmatpush.bf16.msra.mxu3 %v308_v34 }
  0x7c   :  { %v129_v19 = vpop.permute.xlu0 %128 }
  0x82   :  { %v68_v12 = vpop.f32.mrf.mxu0 }
  0x83   :  { %v69_v13 = vadd.f32 %v315_v11, %v68_v12 }
  0x85   :  { %v72_v14 = vmax.f32 %v69_v13, 0.0 }
  0x87   :  { %v73_v15 = vpack.c.bf16 %v72_v14, %v72_v14 }
  0x89   :  { %288 = vmatmul.msk.bf16.vlgmr.msra.gmra.mxu1 %vm106_vm2, %v73_v15 }
  0x8a   :  { %v70_v16 = vpop.f32.mrf.mxu0 }
 0x106   :  { %v123_v18 = vpop.f32.mrf.mxu1 }
 0x107   :  { %v124_v20 = vadd.f32 %v316_v17, %v123_v18 }
 0x109   :  { %v131_v21 = vmul.f32 %v129_v19, %v124_v20  ;;  %238 = vst.msk [vmem:[#allocation4] sm:$0xff] %vm237_vm3, %v124_v20 }
 0x10a   :  { %260 = dma.vmem_to_hbm [thread:$0]  %s256_s23, 128, %s258_s0, [#allocation5]  }
 0x10b   :  { %133 = vrot.lane.b32.xlu0 %v131_v21, %s376_s1 }
 0x10e   :  { %v125_v22 = vpop.f32.mrf.mxu1 }
 0x17d   :  { %v134_v30 = vpop.permute.xlu0 %133 }
 0x17e   :  { %v136_v31 = vadd.f32 %v134_v30, %v124_v20 }
 0x180   :  { %v137_v32 = vpack.c.bf16 %v136_v31, %v136_v31 }
 0x182   :  { %289 = vmatmul.msk.bf16.vlgmr.msra.gmra.mxu2 %vm143_vm5, %v137_v32 }
 0x205   :  { %v160_v36 = vpop.f32.mrf.mxu2 }
 0x206   :  { %v161_v37 = vadd.f32 %v317_v35, %v160_v36 }
 0x208   :  { %v164_v38 = vmax.f32 %v161_v37, 0.0 }
 0x20a   :  { %v165_v39 = vpack.c.bf16 %v164_v38, %v164_v38 }
 0x20c   :  { %302 = vmatmul.msk.bf16.vlgmr.msra.gmra.mxu3 %vm106_vm2, %v165_v39 }
 0x20d   :  { %v162_v40 = vpop.f32.mrf.mxu2 }
 0x28f   :  { %v213_v42 = vpop.f32.mrf.mxu3 }
 0x290   :  { %v214_v43 = vadd.f32 %v318_v41, %v213_v42 }
 0x292   :  { %v303_v44 = vmul.f32 -1.442695, %v214_v43 }
 0x294   :  { %319 = vpow2.f32 %v303_v44 }
 0x297   :  { %v215_v45 = vpop.f32.mrf.mxu3 }
 0x29a   :  { %v320_v46 = vpop.eup %319 }
 0x29b   :  { %v220_v47 = vadd.f32 1.0, %v320_v46 }
 0x29d   :  { %321 = vrcp.f32 %v220_v47  ;;  %v232_v51 = vand.u32 2147483648, %v220_v47  ;;  %v230_v53 = vand.u32 2147483647, %v220_v47  ;;  %vm226_vm7 = vweird.f32 %v220_v47 }
 0x29f   :  { %v233_v55 = vor.u32 1.1754944e-38, %v232_v51  ;;  %vm231_vm9 = vcmp.eq.f32.partialorder %v230_v53, 8.507059e+37 }
 0x2a3   :  { %v322_v48 = vpop.eup %321 }
 0x2a4   :  { %v222_v49 = vmul.f32 %v322_v48, %v220_v47  ;;  %vm227_vm6 = vweird.f32 %v322_v48 }
 0x2a5   :  { %vm228_vm8 = vmor %vm226_vm7, %vm227_vm6 }
 0x2a6   :  { %v223_v50 = vsub.f32 1.0, %v222_v49 }
 0x2a8   :  { %v224_v52 = vmul.f32 %v322_v48, %v223_v50 }
 0x2aa   :  { %v225_v54 = vadd.f32 %v322_v48, %v224_v52 }
 0x2ac   :  { %v229_v56 = vsel %vm228_vm8, %v322_v48, %v225_v54 }
 0x2ad   :  { %v234_v57 = vsel %vm231_vm9, %v233_v55, %v229_v56 }
 0x2ae   :  { %236 = vst.msk [vmem:[#allocation2] sm:$0xff] %vm55_vm0, %v234_v57 }
 0x2af   :  { %249 = dma.vmem_to_hbm [thread:$0]  %s245_s11, 128, %s247_s9, [#allocation3]  }
 0x2b0   :  { %371 = dma.done.wait [#allocation3], 128  }
 0x2b1   :  { %372 = vsyncadd [#allocation3], 4294967168 }
 0x2b2   :  { %373 = dma.done.wait [#allocation5], 128  }
 0x2b3   :  { %374 = vsyncadd [#allocation5], 4294967168 }
 0x2b4   :  { %269 = vsyncpa [#allocation3], 1 }
 0x2b5   :  { %270 = vsyncpa [#allocation5], 1 }

</bundles_post_ra>
